<compile_context>
chip_gen: v5e
topology: v5e:2x2
jax: 0.10.0
libtpu: 0.0.40
codegen_flags: <defaults>
</compile_context>

<pallas_src>
import jax
import jax.numpy as jnp
from jax.experimental import pallas as pl
from jax.experimental.pallas import tpu as pltpu


def _residual_linear_kernel(x_lhs_ref, w_ref, x_res_ref, b_ref, o_ref, acc_ref):
    k = pl.program_id(2)

    @pl.when(k == 0)
    def _init():
        # Fold the bias into the accumulator init: acc = broadcast(b).
        acc_ref[...] = jnp.broadcast_to(
            b_ref[...].astype(jnp.float32), acc_ref.shape
        )

    # MXU contraction over the K tile, f32 accumulation.
    acc_ref[...] += jnp.dot(
        x_lhs_ref[...], w_ref[...], preferred_element_type=jnp.float32
    )

    @pl.when(k == pl.num_programs(2) - 1)
    def _finalize():
        # Residual add in f32, single cast to the output dtype.
        res = acc_ref[...] + x_res_ref[...].astype(jnp.float32)
        o_ref[...] = res.astype(o_ref.dtype)


def _round_up(a, m):
    return (a + m - 1) // m * m


def residual_linear(x, w, b, *, tm=128, tn=128, tk=256, compute_dtype=None):
    """out = x + (x @ w + b), fused in one tiled, pipelined Pallas TPU kernel.

    compute_dtype: optionally cast the matmul operands (x, W) to e.g.
    jnp.bfloat16 for 2x MXU throughput; accumulation stays f32 and the
    residual add / output stay in x.dtype.
    """
    n, h = x.shape
    assert w.shape == (h, h) and b.shape == (1, h)
    out_dtype = x.dtype

    # Lane-dense layout: pad rows to a multiple of 8 (sublane) and features to
    # a multiple of 128 (lane). Zero-padding is exact: padded K columns of W
    # contribute nothing and padded output rows/cols are sliced off.
    tm = min(tm, _round_up(n, 8))
    n_pad = _round_up(n, tm)
    h_pad = _round_up(h, 128)
    tn = min(tn, h_pad)
    tk = tk if h_pad % tk == 0 else 128

    if (n_pad, h_pad) != (n, h):
        x = jnp.pad(x, ((0, n_pad - n), (0, h_pad - h)))
        w = jnp.pad(w, ((0, h_pad - h), (0, h_pad - h)))
        b = jnp.pad(b, ((0, 0), (0, h_pad - h)))

    x_lhs = x if compute_dtype is None else x.astype(compute_dtype)
    w_in = w if compute_dtype is None else w.astype(compute_dtype)

    grid = (n_pad // tm, h_pad // tn, h_pad // tk)

    out = pl.pallas_call(
        _residual_linear_kernel,
        out_shape=jax.ShapeDtypeStruct((n_pad, h_pad), out_dtype),
        grid_spec=pltpu.PrefetchScalarGridSpec(
            num_scalar_prefetch=0,
            grid=grid,
            in_specs=[
                pl.BlockSpec((tm, tk), lambda i, j, k: (i, k)),  # x (matmul LHS)
                pl.BlockSpec((tk, tn), lambda i, j, k: (k, j)),  # W tile
                pl.BlockSpec((tm, tn), lambda i, j, k: (i, j)),  # x (residual), resident over k
                pl.BlockSpec((1, tn), lambda i, j, k: (0, j)),   # bias tile
            ],
            out_specs=pl.BlockSpec((tm, tn), lambda i, j, k: (i, j)),
            scratch_shapes=[pltpu.VMEM((tm, tn), jnp.float32)],
        ),
        compiler_params=pltpu.CompilerParams(
            dimension_semantics=("parallel", "parallel", "arbitrary"),
        ),
    )(x_lhs, w_in, x, b)

    if (n_pad, h_pad) != (n, h):
        out = out[:n, :h]
    return out


if __name__ == "__main__":
    key = jax.random.PRNGKey(0)
    kx, kw, kb, kx2, kw2, kb2 = jax.random.split(key, 6)

    # --- Lane-dense, MXU-shaped case (exercises all three grid axes) ---
    N, H = 256, 512
    x = jax.random.normal(kx, (N, H), dtype=jnp.float32)
    w = jax.random.normal(kw, (H, H), dtype=jnp.float32) * (1.0 / jnp.sqrt(H))
    b = jax.random.normal(kb, (1, H), dtype=jnp.float32) * 0.01

    out = residual_linear(x, w, b)
    jax.block_until_ready(out)
    ref = x + (jnp.dot(x, w, preferred_element_type=jnp.float32) + b)
    assert jnp.allclose(out, ref, atol=2e-2, rtol=2e-2), "mismatch vs reference (f32)"

    # bf16 operands on the MXU (f32 accumulation); looser tolerance.
    out_bf16 = residual_linear(x, w, b, compute_dtype=jnp.bfloat16)
    jax.block_until_ready(out_bf16)
    assert jnp.allclose(out_bf16, ref, atol=1e-1, rtol=1e-1), "mismatch vs reference (bf16)"

    # --- Original toy shape (N=8, H=32) via the padding path ---
    N2, H2 = 8, 32
    x2 = jax.random.normal(kx2, (N2, H2), dtype=jnp.float32)
    w2 = jax.random.normal(kw2, (H2, H2), dtype=jnp.float32) * (1.0 / jnp.sqrt(H2))
    b2 = jax.random.normal(kb2, (1, H2), dtype=jnp.float32) * 0.01

    out2 = residual_linear(x2, w2, b2)
    jax.block_until_ready(out2)
    ref2 = x2 + (jnp.dot(x2, w2, preferred_element_type=jnp.float32) + b2)
    assert jnp.allclose(out2, ref2, atol=1e-3, rtol=1e-3), "mismatch vs reference (toy)"

    print("KERNEL_OK")
</pallas_src>

<mosaic_0001>
module attributes {stable_mosaic.version = 11 : i64} {
  func.func @_residual_linear_kernel(%arg0: i32, %arg1: i32, %arg2: i32, %arg3: memref<128x256xf32, #tpu.memory_space<vmem>>, %arg4: memref<256x128xf32, #tpu.memory_space<vmem>>, %arg5: memref<128x128xf32, #tpu.memory_space<vmem>>, %arg6: memref<1x128xf32, #tpu.memory_space<vmem>>, %arg7: memref<128x128xf32, #tpu.memory_space<vmem>>, %arg8: memref<128x128xf32, #tpu.memory_space<vmem>>) attributes {dimension_semantics = [#tpu.dimension_semantics<parallel>, #tpu.dimension_semantics<parallel>, #tpu.dimension_semantics<arbitrary>], iteration_bounds = array<i64: 2, 4, 2>, scalar_prefetch = 0 : i64, scratch_operands = 1 : i64, tpu.core_type = #tpu.core_type<tc>, window_params = [{transform_indices = @transform_0, window_bounds = array<i64: 128, 256>}, {transform_indices = @transform_1, window_bounds = array<i64: 256, 128>}, {transform_indices = @transform_2, window_bounds = array<i64: 128, 128>}, {transform_indices = @transform_3, window_bounds = array<i64: 1, 128>}, {transform_indices = @transform_4, window_bounds = array<i64: 128, 128>}]} {
    %c0_i32 = arith.constant 0 : i32
    %0 = arith.cmpi eq, %arg2, %c0_i32 : i32
    %1 = arith.extui %0 : i1 to i32
    %c0_i32_0 = arith.constant 0 : i32
    %2 = arith.cmpi ne, %1, %c0_i32_0 : i32
    scf.if %2 {
      %c0_9 = arith.constant 0 : index
      %c0_10 = arith.constant 0 : index
      %12 = vector.load %arg6[%c0_9, %c0_10] : memref<1x128xf32, #tpu.memory_space<vmem>>, vector<1x128xf32>
      %13 = vector.shape_cast %12 : vector<1x128xf32> to vector<1x128xf32>
      %14 = vector.broadcast %13 : vector<1x128xf32> to vector<128x128xf32>
      %c0_11 = arith.constant 0 : index
      %c0_12 = arith.constant 0 : index
      %15 = vector.load %arg8[%c0_11, %c0_12] : memref<128x128xf32, #tpu.memory_space<vmem>>, vector<128x128xf32>
      tpu.vector_store %arg8[%c0_11, %c0_12], %14 {strides = array<i32>} : memref<128x128xf32, #tpu.memory_space<vmem>>, vector<128x128xf32>,
    } else {
    }
    %c0 = arith.constant 0 : index
    %c0_1 = arith.constant 0 : index
    %3 = vector.load %arg8[%c0, %c0_1] : memref<128x128xf32, #tpu.memory_space<vmem>>, vector<128x128xf32>
    %c0_2 = arith.constant 0 : index
    %c0_3 = arith.constant 0 : index
    %4 = vector.load %arg3[%c0_2, %c0_3] : memref<128x256xf32, #tpu.memory_space<vmem>>, vector<128x256xf32>
    %c0_4 = arith.constant 0 : index
    %c0_5 = arith.constant 0 : index
    %5 = vector.load %arg4[%c0_4, %c0_5] : memref<256x128xf32, #tpu.memory_space<vmem>>, vector<256x128xf32>
    %cst = arith.constant dense<0.000000e+00> : vector<128x128xf32>
    %6 = tpu.matmul %4, %5, %cst {dimension_numbers = #tpu.dot_dimension_numbers<[1], [0], [0], [1], [0, 0, 1, 1], [], []>} : vector<128x256xf32>, vector<256x128xf32>, vector<128x128xf32> -> vector<128x128xf32>
    %7 = arith.addf %3, %6 : vector<128x128xf32>
    %c0_6 = arith.constant 0 : index
    %c0_7 = arith.constant 0 : index
    %8 = vector.load %arg8[%c0_6, %c0_7] : memref<128x128xf32, #tpu.memory_space<vmem>>, vector<128x128xf32>
    tpu.vector_store %arg8[%c0_6, %c0_7], %7 {strides = array<i32>} : memref<128x128xf32, #tpu.memory_space<vmem>>, vector<128x128xf32>,
    %c1_i32 = arith.constant 1 : i32
    %9 = arith.cmpi eq, %arg2, %c1_i32 : i32
    %10 = arith.extui %9 : i1 to i32
    %c0_i32_8 = arith.constant 0 : i32
    %11 = arith.cmpi ne, %10, %c0_i32_8 : i32
    scf.if %11 {
      %c0_9 = arith.constant 0 : index
      %c0_10 = arith.constant 0 : index
      %12 = vector.load %arg8[%c0_9, %c0_10] : memref<128x128xf32, #tpu.memory_space<vmem>>, vector<128x128xf32>
      %c0_11 = arith.constant 0 : index
      %c0_12 = arith.constant 0 : index
      %13 = vector.load %arg5[%c0_11, %c0_12] : memref<128x128xf32, #tpu.memory_space<vmem>>, vector<128x128xf32>
      %14 = arith.addf %12, %13 : vector<128x128xf32>
      %c0_13 = arith.constant 0 : index
      %c0_14 = arith.constant 0 : index
      %15 = vector.load %arg7[%c0_13, %c0_14] : memref<128x128xf32, #tpu.memory_space<vmem>>, vector<128x128xf32>
      tpu.vector_store %arg7[%c0_13, %c0_14], %14 {strides = array<i32>} : memref<128x128xf32, #tpu.memory_space<vmem>>, vector<128x128xf32>,
    } else {
    }
    return
  }
  func.func @transform_0(%arg0: i32, %arg1: i32, %arg2: i32) -> (i32, i32) {
    %c0_i32 = arith.constant 0 : i32
    return %arg0, %arg2 : i32, i32
  }
  func.func @transform_1(%arg0: i32, %arg1: i32, %arg2: i32) -> (i32, i32) {
    %c0_i32 = arith.constant 0 : i32
    return %arg2, %arg1 : i32, i32
  }
  func.func @transform_2(%arg0: i32, %arg1: i32, %arg2: i32) -> (i32, i32) {
    %c0_i32 = arith.constant 0 : i32
    return %arg0, %arg1 : i32, i32
  }
  func.func @transform_3(%arg0: i32, %arg1: i32, %arg2: i32) -> (i32, i32) {
    %c0_i32 = arith.constant 0 : i32
    %c0_i32_0 = arith.constant 0 : i32
    return %c0_i32, %arg1 : i32, i32
  }
  func.func @transform_4(%arg0: i32, %arg1: i32, %arg2: i32) -> (i32, i32) {
    %c0_i32 = arith.constant 0 : i32
    return %arg0, %arg1 : i32, i32
  }
}

</mosaic_0001>

<bundles_post_ra>
// kernel: tpu_custom_call.1
= control target key start
LH: loop header
LB: loop body
LE: loop exit
PB: predicated region body
PF: predicated region fallthrough
CT: control target
= control target key end

     0   :  { %s1993_s0 = inlined_call_operand.hbm [shape: f32[256,512], index: 0, kind: input, shape index: {}]   ;;  %s1994_s1 = inlined_call_operand.hbm [shape: f32[512,512], index: 1, kind: input, shape index: {}]   ;;  %s1995_s2 = inlined_call_operand.hbm [shape: f32[256,512], index: 2, kind: input, shape index: {}]   ;;  %s1996_s3 = inlined_call_operand.hbm [shape: f32[1,512], index: 3, kind: input, shape index: {}]   ;;  %s1997_s4 = inlined_call_operand.hbm [shape: f32[256,512], index: 4, kind: output, shape index: {}]  }
   0x1   :  { %2019 = sst [smem:[#allocation33_spill]] %s1993_s0 }
   0x2   :  { %2020 = sst [smem:[#allocation34_spill]] %s1994_s1 }
   0x3   :  { %2021 = sst [smem:[#allocation35_spill]] %s1995_s2 }
   0x4   :  { %2022 = sst [smem:[#allocation36_spill]] %s1996_s3 }
   0x5   :  { %2023 = sst [smem:[#allocation37_spill]] %s1997_s4 }
   0x6   :  { %9 = vsyncpa [#allocation4], 0 }
   0x7   :  { %11 = vsyncpa [#allocation4 + $0x1], 0 }
   0x8   :  { %12 = vsyncpa [#allocation7], 0 }
   0x9   :  { %14 = vsyncpa [#allocation7 + $0x1], 0 }
   0xa   :  { %15 = vsyncpa [#allocation10], 0 }
   0xb   :  { %17 = vsyncpa [#allocation10 + $0x1], 0 }
   0xc   :  { %18 = vsyncpa [#allocation5], 0 }
   0xd   :  { %20 = vsyncpa [#allocation5 + $0x1], 0  ;;  %s1495_s15 = smov 0   ;;  %s1497_s16 = smov 0  }
   0xe   :  { %s1499_s17 = smov 0   ;;  %s1501_s18 = smov 0  }
   0xf   :  { %s1503_s19 = smov 0   ;;  %s1505_s20 = smov 0  }
  0x10   :  { %s1507_s21 = smov 0   ;;  %s1509_s22 = smov 0  }
  0x11   :  { %s1511_s23 = smov 0   ;;  %s1513_s24 = smov 0  }
  0x12   :  { %s1515_s25 = smov 0   ;;  %s1517_s26 = smov 0  }
  0x13   :  { %s1519_s27 = smov 0   ;;  %s1521_s28 = smov 0  }
  0x14   :  { %s1523_s29 = smov 0   ;;  %s1525_s30 = smov 0  }
  0x15   :  { %s1527_s5 = smov 0   ;;  %s1529_s6 = smov 0  }
  0x16   :  { %s1531_s7 = smov 0  }
  0x17 LB: > { %2024 = sst [smem:[#allocation17_spill]] %s1388_s15  ;;  %s38_s8 = sadd.s32 1, %s1448_s30  ;;  %s1460_s7 = sphi %s1531_s7, %s26_s7   ;;  %s1456_s6 = sphi %s1529_s6, %s2098_s6   ;;  %s1452_s5 = sphi %s1527_s5, %s2097_s5   ;;  %s1448_s30 = sphi %s1525_s30, %s2084_s30   ;;  %s1444_s29 = sphi %s1523_s29, %s2083_s29   ;;  %s1440_s28 = sphi %s1521_s28, %s2096_s28   ;;  %s1436_s27 = sphi %s1519_s27, %s2082_s27   ;;  %s1432_s26 = sphi %s1517_s26, %s2095_s26   ;;  %s1428_s25 = sphi %s1515_s25, %s2094_s25   ;;  %s1424_s24 = sphi %s1513_s24, %s2093_s24   ;;  %s1420_s23 = sphi %s1511_s23, %s2092_s23   ;;  %s1416_s22 = sphi %s1509_s22, %s2080_s22   ;;  %s1412_s21 = sphi %s1507_s21, %s2091_s21   ;;  %s1408_s20 = sphi %s1505_s20, %s2090_s20   ;;  %s1404_s19 = sphi %s1503_s19, %s2089_s19   ;;  %s1400_s18 = sphi %s1501_s18, %s2088_s18   ;;  %s1396_s17 = sphi %s1499_s17, %s2087_s17   ;;  %s1392_s16 = sphi %s1497_s16, %s2078_s16   ;;  %s1388_s15 = sphi %s1495_s15, %s2077_s15  }
  0x18   : > { %2025 = sst [smem:[#allocation18_spill]] %s1392_s16  ;;  %p39_p0 = scmp.ge.s32.totalorder %s38_s8, 2 }
  0x19   : > { %2026 = sst [smem:[#allocation19_spill]] %s1396_s17  ;;  %s41_s9 = sadd.s32 1, %s1452_s5 }
  0x1a   : > { %2027 = sst [smem:[#allocation20_spill]] %s1412_s21  ;;  %p2015_p1 = scmp.eq.s32.totalorder %s1460_s7, 0 }
  0x1b   : > { %2028 = sst [smem:[#allocation21_spill]] %s1416_s22  ;;  %p89_p2 = scmp.ne.s32.totalorder %s1420_s23, %s1416_s22 }
  0x1c   : > { %2029 = sst [smem:[#allocation22_spill]] %s1420_s23  ;;  %s2100_s8 = smov (%p39_p0, %s38_s8), 0 }
  0x1d   : > { %2030 = sst [smem:[#allocation23_spill]] %s1436_s27  ;;  %s2102_s9 = smov (!%p39_p0, %s41_s9), %s1452_s5 }
  0x1e   : > { %2031 = sst [smem:[#allocation24_spill]] %s1440_s28  ;;  %s1602_s10 = ssub.s32 %s1448_s30, %s2100_s8 }
  0x1f   : > { %2032 = sst [smem:[#allocation25_spill]] %s1444_s29  ;;  %p91_p3 = por %p89_p2, %p2015_p1 }
  0x20   : > { %2033 = sst [smem:[#allocation26_spill]] %s1448_s30  ;;  %p2013_p4 = scmp.lt.s32.totalorder %s1460_s7, 16 }
  0x21   : > { %2034 = sst [smem:[#allocation27_spill]] %s1456_s6  ;;  %s226_s12 = sand.u32 1, %s1460_s7  }
  0x22   : > { %2035 = sst [smem:[#allocation28_spill]] %s2100_s8  ;;  %s228_s13 = sand.u32 1, %s1420_s23  }
  0x23   : > { %s895_s14 = sshll.u32 %s228_s13, 8  ;;  %s917_s4 = sshll.u32 %s1448_s30, 7 }
  0x24   : > { %s235_s28 = sadd.s32 %s1452_s5, %s917_s4  ;;  %s230_s29 = scalar_lea.vmem [#allocation6], %s895_s14 }
  0x25   : > { %s240_s27 = sshll.u32 %s230_s29, 4  ;;  %s898_s3 = sshll.u32 %s235_s28, 3  ;;  %s241_s27 = int_to_ptr.vmem [resolvable:$true] %s240_s27 }
  0x26   : > { %s2036_s1 = sld [smem:[#allocation34_spill]]  ;;  %p966_p5 = pnand %p2013_p4, %p91_p3 }
  0x27   : > { %p903_p6 = scmp.ge.s32.totalorder %s1460_s7, 1  ;;  %s1618_s29 = scalar_lea.sflag [#allocation7], %s226_s12 }
  0x28   : > { %s2003_s28 = smov 512   ;;  %s2001_s13 = smov 128  }
  0x29   : > { %s2002_s8 = smov 8   ;;  %p289_p7 = scmp.lt.s32.totalorder %s1460_s7, 17 }
  0x2a   : > { %p95_p9 = scmp.ne.s32.totalorder %s1416_s22, %s1412_s21  ;;  %p43_p10 = scmp.ge.s32.totalorder %s2102_s9, 4 }
  0x2b   : > { %p1625_p8 = pnand %p903_p6, %p289_p7  ;;  %p61_p11 = scmp.ne.s32.totalorder %s1432_s26, %s1428_s25 }
  0x2c   : > { %s237_s16 = scalar_lea.hbm %s2036_s1, %s898_s3  ;;  %s54_s11 = sadd.s32 1, %s1432_s26 }
  0x2d   : > { %s238_s4 = sshll.u32 %s237_s16, 4  ;;  %s45_s16 = sadd.s32 1, %s1456_s6  ;;  %s239_s4 = int_to_ptr.hbm [resolvable:$true] %s238_s4 }
  0x2e   : > { %968 = dma.hbm_to_vmem [thread:$0]  (!%p966_p5), %s239_s4, 4096, %s241_s27, %s1618_s29, %s2003_s28, %s2001_s13, %s2002_s8  }
  0x2f   : > { %s2037_s3 = scalar_select %p1625_p8, 1, 0 }
  0x30   : > { %s2104_s16 = smov (!%p43_p10, %s45_s16), %s1456_s6  ;;  %p1641_p12 = por %p2015_p1, %p61_p11 }
  0x31   : > { %2038 = sst [smem:[#allocation29_spill]] %s2037_s3  ;;  %p47_p13 = scmp.ge.s32.totalorder %s2104_s16, 2 }
  0x32   : > { %s201_s27 = sand.u32 1, %s1432_s26   ;;  %s892_s13 = sshll.u32 %s1448_s30, 1 }
  0x33   : > { %s890_s14 = sshll.u32 %s201_s27, 8  ;;  %s2106_s16 = smov (%p47_p13, %s2104_s16), 0 }
  0x34   : > { %2040 = sst [smem:[#allocation30_spill]] %s2106_s16  ;;  %s2041_s4 = smov %s2106_s16 }
  0x35   : > { %s1651_s8 = ssub.s32 %s1456_s6, %s2041_s4  ;;  %s916_s28 = sshll.u32 %s1456_s6, 6 }
  0x36   : > { %s51_s1 = sor.u32 %s1602_s10, %s1651_s8  ;;  %s211_s3 = sadd.s32 %s916_s28, %s892_s13 }
  0x37   : > { %p52_p0 = scmp.eq.s32.totalorder %s51_s1, 0  ;;  %s894_s23 = sshll.u32 %s211_s3, 3 }
  0x38   : > { %s2042_s0 = sld [smem:[#allocation33_spill]]  ;;  %s205_s17 = scalar_lea.vmem [#allocation3], %s890_s14 }
  0x39   : > { %s216_s16 = sshll.u32 %s205_s17, 4  ;;  %p963_p2 = pnand %p2013_p4, %p1641_p12  ;;  %s217_s16 = int_to_ptr.vmem [resolvable:$true] %s216_s16 }
  0x3a   : > { %s1660_s30 = scalar_select %p52_p0, %s1432_s26, %s54_s11  }
  0x3b   : > { %s259_s1 = sadd.s32 %s1452_s5, %s916_s28  ;;  %s202_s17 = scalar_lea.sflag [#allocation4], %s201_s27 }
  0x3c   : > { %2043 = sst [smem:[#allocation31_spill]] %s1660_s30  ;;  %s1465_s21 = smov 256  }
  0x3d   : > { %s1466_s22 = smov 16   ;;  %p67_p3 = scmp.ne.s32.totalorder %s1428_s25, %s1424_s24 }
  0x3e   : > { %s213_s15 = scalar_lea.hbm %s2042_s0, %s894_s23  ;;  %s2044_s23 = smov 512  }
  0x3f   : > { %s214_s4 = sshll.u32 %s213_s15, 4  ;;  %s902_s15 = sshll.u32 %s259_s1, 3  ;;  %s215_s4 = int_to_ptr.hbm [resolvable:$true] %s214_s4 }
  0x40   : > { %965 = dma.hbm_to_vmem [thread:$0]  (!%p963_p2), %s215_s4, 4096, %s217_s16, %s202_s17, %s2044_s23, %s1465_s21, %s1466_s22  }
  0x41   : > { %s2045_s2 = sld [smem:[#allocation35_spill]]  ;;  %s887_s12 = sadd.s32 4294967294, %s1460_s7  }
  0x42   : > { %p2014_p5 = scmp.ne.s32.totalorder %s1408_s20, %s1404_s19  ;;  %p123_p6 = scmp.ne.s32.totalorder %s1404_s19, %s1400_s18 }
  0x43   : > { %s2046_s28 = sld [smem:[#allocation19_spill]]  ;;  %p181_p7 = scmp.eq.s32.totalorder %s887_s12, 15 }
  0x44   : > { %p119_p11 = por %p2014_p5, %p2015_p1  ;;  %s2047_s27 = sld [smem:[#allocation17_spill]] }
  0x45   : > { %s2048_s4 = sld [smem:[#allocation18_spill]]  ;;  %s252_s16 = sand.u32 1, %s1408_s20  }
  0x46   : > { %p1687_p12 = por %p181_p7, %p123_p6  ;;  %s899_s17 = sshll.u32 %s252_s16, 7 }
  0x47   : > { %s261_s11 = scalar_lea.hbm %s2045_s2, %s902_s15  ;;  %s254_s15 = scalar_lea.vmem [#allocation8], %s899_s17 }
  0x48   : > { %s262_s14 = sshll.u32 %s261_s11, 4  ;;  %s264_s13 = sshll.u32 %s254_s15, 4  ;;  %s263_s14 = int_to_ptr.hbm [resolvable:$true] %s262_s14  ;;  %s265_s13 = int_to_ptr.vmem [resolvable:$true] %s264_s13 }
  0x49   : > { %s2049_s1 = scalar_select %p1687_p12, 1, 0 }
  0x4a   : > { %p969_p13 = pnand %p2013_p4, %p119_p11  ;;  %s2052_s3 = sld [smem:[#allocation22_spill]] }
  0x4b   : > { %s2053_s11 = smov 8   ;;  %s2054_s12 = smov 128  }
  0x4c   : > { %971 = dma.hbm_to_vmem [thread:$0]  (!%p969_p13), %s263_s14, 2048, %s265_s13, %s1618_s29, %s2044_s23, %s2054_s12, %s2053_s11  }
  0x4d   : > { %s110_s0 = sadd.s32 1, %s1408_s20  ;;  %s1699_s16 = sadd.s32 4294967295, %s1460_s7  }
  0x4e   : > { %s2108_s9 = smov (%p43_p10, %s2102_s9), 0  ;;  %p68_p0 = scmp.eq.s32.totalorder %s1699_s16, 0 }
  0x4f   : > { %2055 = sst [smem:[#allocation32_spill]] %s2108_s9  ;;  %s136_s17 = sadd.s32 1, %s2046_s28 }
  0x50   : > { %s78_s29 = ssub.s32 %s1452_s5, %s2108_s9  ;;  %p149_p2 = scmp.ne.s32.totalorder %s2048_s4, %s2047_s27 }
  0x51   : > { %p1717_p7 = por %p68_p0, %p67_p3  ;;  %s79_s14 = sor.u32 %s78_s29, %s1602_s10 }
  0x52   : > { %p80_p10 = scmp.eq.s32.totalorder %s79_s14, 0  ;;  %p1727_p11 = por %p95_p9, %p68_p0 }
  0x53   : > { %s107_s13 = sor.u32 %s78_s29, %s1651_s8  ;;  %p1737_p13 = por %p123_p6, %p68_p0 }
  0x54   : > { %s2059_s27 = sadd.s32 1, %s2052_s3  ;;  %p108_p3 = scmp.eq.s32.totalorder %s107_s13, 0 }
  0x55   : > { %s2058_s24 = scalar_select %p1737_p13, 1, 0 }
  0x56   : > { %s2110_s3 = smov (!%p80_p10, %s2052_s3), %s2059_s27  ;;  %p134_p4 = scmp.eq.s32.totalorder %s78_s29, 0 }
  0x57   : > { %p143_p5 = scmp.ne.s32.totalorder %s2046_s28, %s2048_s4  ;;  %p1750_p1 = por %p149_p2, %p68_p0 }
  0x58   : > { %s1755_s21 = scalar_select %p108_p3, %s1408_s20, %s110_s0  }
  0x59   : > { %s1758_s8 = scalar_select %p134_p4, %s2046_s28, %s136_s17  }
  0x5a   : > { %p175_p9 = scmp.eq.s32.totalorder %s1699_s16, 15  ;;  %s274_s22 = sand.u32 1, %s2046_s28  }
  0x5b   : > { %p2061_p6 = scmp.eq.s32.totalorder %s1460_s7, 0  ;;  %p2062_p13 = scmp.ne.s32.totalorder %s1408_s20, %s1404_s19 }
  0x5c   : > { %s2064_s29 = sld [smem:[#allocation36_spill]]  ;;  %s277_s27 = scalar_lea.vmem [#allocation9], %s274_s22 }
  0x5d   : > { %p145_p12 = por %p143_p5, %p2061_p6  ;;  %p1767_p10 = por %p175_p9, %p2062_p13 }
  0x5e   : > { %s284_s2 = sshll.u32 %s277_s27, 4  ;;  %p2065_p4 = scmp.lt.s32.totalorder %s1460_s7, 16  ;;  %s285_s2 = int_to_ptr.vmem [resolvable:$true] %s284_s2 }
  0x5f   : > { %s275_s0 = scalar_lea.sflag [#allocation10], %s274_s22  ;;  %s295_s17 = sand.u32 (!%p1625_p8), 1, %s1428_s25  }
  0x60   : > { %p972_p0 = pnand %p2065_p4, %p145_p12  ;;  %293 = sbr.rel (%p1625_p8) target bundleno = 425 (0x1a9), region = 36 }
  0x61   : > { %s904_s9 = sshll.u32 (!%p1625_p8), %s295_s17, 8  ;;  %s296_s6 = scalar_lea.sflag (!%p1625_p8), [#allocation4], %s295_s17 }
  0x62   : > { %s280_s14 = scalar_lea.hbm %s2064_s29, %s1452_s5  ;;  %s1780_s30 = scalar_lea.vmem (!%p1625_p8), [#allocation3], %s904_s9 }
  0x63   : > { %s282_s13 = sshll.u32 %s280_s14, 4  ;;  %s283_s13 = int_to_ptr.hbm [resolvable:$true] %s282_s13 }
  0x64   : > { %974 = dma.hbm_to_vmem [thread:$0]  (!%p972_p0), %s283_s13, 16, %s285_s2, %s275_s0  }
  0x65   : > { %1367 = dma.done.wait (%p1717_p7), %s296_s6, 4096  }
  0x66   : > { %1369 = vsyncadd (%p1717_p7), %s296_s6, 4294963200  ;;  %s2067_s12 = sld [smem:[#allocation21_spill]]  ;;  %s305_s22 = sand.u32 1, %s1699_s16  }
  0x67   : > { %s306_s29 = scalar_lea.sflag [#allocation7], %s305_s22 }
  0x6c   : > { %s307_s2 = sand.u32 1, %s2067_s12  }
  0x6d   : > { %s905_s4 = sshll.u32 %s307_s2, 8 }
  0x6e   : > { %s1788_s14 = scalar_lea.vmem [#allocation6], %s905_s4 }
  0x6f   : > { %1371 = dma.done.wait (%p1727_p11), %s306_s29, 4096  }
  0x70   : > { %1373 = vsyncadd (%p1727_p11), %s306_s29, 4294963200  ;;  %s317_s9 = sand.u32 1, %s1404_s19   ;;  %p2068_p8 = scmp.ne.s32.totalorder %s2058_s24, 0 }
  0x71   : > { %s906_s6 = sshll.u32 %s317_s9, 7 }
  0x72   : > { %s1797_s23 = scalar_lea.vmem [#allocation8], %s906_s6 }
  0x73   : > { %1375 = dma.done.wait (%p2068_p8), %s306_s29, 2048  }
  0x74   : > { %1377 = vsyncadd (%p2068_p8), %s306_s29, 4294965248  ;;  %s2069_s16 = sld [smem:[#allocation18_spill]] }
  0x7a   : > { %s325_s13 = sand.u32 1, %s2069_s16  }
  0x7b   : > { %s326_s27 = scalar_lea.sflag [#allocation10], %s325_s13  ;;  %s328_s0 = scalar_lea.vmem [#allocation9], %s325_s13 }
  0x7c   : > { %1379 = dma.done.wait (%p1750_p1), %s326_s27, 16  }
  0x7d   : > { %1381 = vsyncadd (%p1750_p1), %s326_s27, 4294967280  ;;  %s1808_s15 = scalar_lea.vmem [#allocation11], %s906_s6  ;;  %s2070_s28 = sld [smem:[#allocation23_spill]] }
  0x83   : > { %p908_p5 = scmp.ne.s32.totalorder %s2070_s28, 0 }
  0x85   : > { %376 = sbr.rel (%p908_p5) target bundleno = 155 (0x9b), region = 56 }
  0x8a   : > { %v1141_v0 = vld [vmem:[%s328_s0] ss:$0 sm:$0xff] }
  0x8b   : > { %381 = vst [vmem:[#allocation2 + $0x30] sm:$0xff] %v1141_v0 }
  0x8c   : > { %382 = vst [vmem:[#allocation2] sm:$0xff] %v1141_v0 }
  0x8d   : > { %383 = vst [vmem:[#allocation2 + $0x58] sm:$0xff] %v1141_v0 }
  0x8e   : > { %384 = vst [vmem:[#allocation2 + $0x18] sm:$0xff] %v1141_v0 }
  0x8f   : > { %385 = vst [vmem:[#allocation2 + $0x50] sm:$0xff] %v1141_v0 }
  0x90   : > { %386 = vst [vmem:[#allocation2 + $0x68] sm:$0xff] %v1141_v0 }
  0x91   : > { %387 = vst [vmem:[#allocation2 + $0x8] sm:$0xff] %v1141_v0 }
  0x92   : > { %388 = vst [vmem:[#allocation2 + $0x48] sm:$0xff] %v1141_v0 }
  0x93   : > { %389 = vst [vmem:[#allocation2 + $0x40] sm:$0xff] %v1141_v0 }
  0x94   : > { %390 = vst [vmem:[#allocation2 + $0x20] sm:$0xff] %v1141_v0 }
  0x95   : > { %391 = vst [vmem:[#allocation2 + $0x10] sm:$0xff] %v1141_v0 }
  0x96   : > { %392 = vst [vmem:[#allocation2 + $0x38] sm:$0xff] %v1141_v0 }
  0x97   : > { %393 = vst [vmem:[#allocation2 + $0x60] sm:$0xff] %v1141_v0 }
  0x98   : > { %394 = vst [vmem:[#allocation2 + $0x70] sm:$0xff] %v1141_v0 }
  0x99   : > { %395 = vst [vmem:[#allocation2 + $0x78] sm:$0xff] %v1141_v0 }
  0x9a   : > { %396 = vst [vmem:[#allocation2 + $0x28] sm:$0xff] %v1141_v0 }
  0x9b PF: > { %v460_v1 = vld [vmem:[%s1788_s14 + $0x78] sm:$0xff]  ;;  %v459_v3 = vld [vmem:[%s1788_s14 + $0x70] sm:$0xff]  ;;  %v458_v5 = vld [vmem:[%s1788_s14 + $0x68] sm:$0xff] }
  0x9c   : > { %v476_v2 = vld [vmem:[%s1788_s14 + $0xf8] sm:$0xff]  ;;  %920 = vmatpush.msra.mxu2 %v460_v1  ;;  %v475_v4 = vld [vmem:[%s1788_s14 + $0xf0] sm:$0xff]  ;;  %v474_v6 = vld [vmem:[%s1788_s14 + $0xe8] sm:$0xff]  ;;  %477 = vmatpush.msra.mxu0 %v460_v1 }
  0x9d   : > { %936 = vmatpush.msra.mxu3 %v476_v2  ;;  %542 = vmatpush.msra.mxu1 %v476_v2  ;;  %v457_v7 = vld [vmem:[%s1788_s14 + $0x60] sm:$0xff]  ;;  %v456_v9 = vld [vmem:[%s1788_s14 + $0x58] sm:$0xff]  ;;  %v455_v11 = vld [vmem:[%s1788_s14 + $0x50] sm:$0xff] }
  0x9e   : > { %921 = vmatpush.msra.mxu2 %v459_v3  ;;  %v473_v8 = vld [vmem:[%s1788_s14 + $0xe0] sm:$0xff]  ;;  %478 = vmatpush.msra.mxu0 %v459_v3  ;;  %v472_v10 = vld [vmem:[%s1788_s14 + $0xd8] sm:$0xff]  ;;  %v471_v12 = vld [vmem:[%s1788_s14 + $0xd0] sm:$0xff] }
  0x9f   : > { %937 = vmatpush.msra.mxu3 %v475_v4  ;;  %543 = vmatpush.msra.mxu1 %v475_v4  ;;  %v454_v13 = vld [vmem:[%s1788_s14 + $0x48] sm:$0xff]  ;;  %v453_v15 = vld [vmem:[%s1788_s14 + $0x40] sm:$0xff]  ;;  %v452_v17 = vld [vmem:[%s1788_s14 + $0x38] sm:$0xff] }
  0xa0   : > { %922 = vmatpush.msra.mxu2 %v458_v5  ;;  %479 = vmatpush.msra.mxu0 %v458_v5  ;;  %v470_v14 = vld [vmem:[%s1788_s14 + $0xc8] sm:$0xff]  ;;  %v469_v16 = vld [vmem:[%s1788_s14 + $0xc0] sm:$0xff]  ;;  %v468_v18 = vld [vmem:[%s1788_s14 + $0xb8] sm:$0xff] }
  0xa1   : > { %938 = vmatpush.msra.mxu3 %v474_v6  ;;  %544 = vmatpush.msra.mxu1 %v474_v6  ;;  %v451_v19 = vld [vmem:[%s1788_s14 + $0x30] sm:$0xff]  ;;  %v450_v21 = vld [vmem:[%s1788_s14 + $0x28] sm:$0xff]  ;;  %v449_v23 = vld [vmem:[%s1788_s14 + $0x20] sm:$0xff] }
  0xa2   : > { %923 = vmatpush.msra.mxu2 %v457_v7  ;;  %480 = vmatpush.msra.mxu0 %v457_v7  ;;  %v467_v20 = vld [vmem:[%s1788_s14 + $0xb0] sm:$0xff]  ;;  %v466_v22 = vld [vmem:[%s1788_s14 + $0xa8] sm:$0xff]  ;;  %v465_v24 = vld [vmem:[%s1788_s14 + $0xa0] sm:$0xff] }
  0xa3   : > { %939 = vmatpush.msra.mxu3 %v473_v8  ;;  %545 = vmatpush.msra.mxu1 %v473_v8  ;;  %v448_v25 = vld [vmem:[%s1788_s14 + $0x18] sm:$0xff]  ;;  %v447_v27 = vld [vmem:[%s1788_s14 + $0x10] sm:$0xff]  ;;  %v446_v29 = vld [vmem:[%s1788_s14 + $0x8] sm:$0xff] }
  0xa4   : > { %924 = vmatpush.msra.mxu2 %v456_v9  ;;  %481 = vmatpush.msra.mxu0 %v456_v9  ;;  %v464_v26 = vld [vmem:[%s1788_s14 + $0x98] sm:$0xff]  ;;  %v463_v28 = vld [vmem:[%s1788_s14 + $0x90] sm:$0xff]  ;;  %v462_v30 = vld [vmem:[%s1788_s14 + $0x88] sm:$0xff] }
  0xa5   : > { %940 = vmatpush.msra.mxu3 %v472_v10  ;;  %546 = vmatpush.msra.mxu1 %v472_v10  ;;  %v445_v31 = vld [vmem:[%s1788_s14] sm:$0xff]  ;;  %v430_v34 = vld [vmem:[%s1780_s30 + $0x88] sm:$0xff]  ;;  %v431_v37 = vld [vmem:[%s1780_s30 + $0x90] sm:$0xff] }
  0xa6   : > { %925 = vmatpush.msra.mxu2 %v455_v11  ;;  %482 = vmatpush.msra.mxu0 %v455_v11  ;;  %v461_v32 = vld [vmem:[%s1788_s14 + $0x80] sm:$0xff]  ;;  %v414_v36 = vld [vmem:[%s1780_s30 + $0x8] sm:$0xff]  ;;  %v432_v38 = vld [vmem:[%s1780_s30 + $0x98] sm:$0xff] }
  0xa7   : > { %941 = vmatpush.msra.mxu3 %v471_v12  ;;  %547 = vmatpush.msra.mxu1 %v471_v12  ;;  %v429_v33 = vld [vmem:[%s1780_s30 + $0x80] sm:$0xff]  ;;  %v415_v39 = vld [vmem:[%s1780_s30 + $0x10] sm:$0xff]  ;;  %v416_v40 = vld [vmem:[%s1780_s30 + $0x18] sm:$0xff] }
  0xa8   : > { %926 = vmatpush.msra.mxu2 %v454_v13  ;;  %483 = vmatpush.msra.mxu0 %v454_v13  ;;  %v413_v35 = vld [vmem:[%s1780_s30] sm:$0xff]  ;;  %v434_v42 = vld [vmem:[%s1780_s30 + $0xa8] sm:$0xff]  ;;  %v435_v45 = vld [vmem:[%s1780_s30 + $0xb0] sm:$0xff] }
  0xa9   : > { %942 = vmatpush.msra.mxu3 %v470_v14  ;;  %548 = vmatpush.msra.mxu1 %v470_v14  ;;  %v433_v41 = vld [vmem:[%s1780_s30 + $0xa0] sm:$0xff]  ;;  %v418_v44 = vld [vmem:[%s1780_s30 + $0x28] sm:$0xff]  ;;  %v436_v46 = vld [vmem:[%s1780_s30 + $0xb8] sm:$0xff] }
  0xaa   : > { %927 = vmatpush.msra.mxu2 %v453_v15  ;;  %484 = vmatpush.msra.mxu0 %v453_v15  ;;  %v417_v43 = vld [vmem:[%s1780_s30 + $0x20] sm:$0xff]  ;;  %v419_v47 = vld [vmem:[%s1780_s30 + $0x30] sm:$0xff]  ;;  %v420_v48 = vld [vmem:[%s1780_s30 + $0x38] sm:$0xff] }
  0xab   : > { %943 = vmatpush.msra.mxu3 %v469_v16  ;;  %549 = vmatpush.msra.mxu1 %v469_v16  ;;  %v437_v49 = vld [vmem:[%s1780_s30 + $0xc0] sm:$0xff]  ;;  %v438_v50 = vld [vmem:[%s1780_s30 + $0xc8] sm:$0xff]  ;;  %v439_v53 = vld [vmem:[%s1780_s30 + $0xd0] sm:$0xff] }
  0xac   : > { %928 = vmatpush.msra.mxu2 %v452_v17  ;;  %485 = vmatpush.msra.mxu0 %v452_v17  ;;  %v421_v51 = vld [vmem:[%s1780_s30 + $0x40] sm:$0xff]  ;;  %v422_v52 = vld [vmem:[%s1780_s30 + $0x48] sm:$0xff]  ;;  %v440_v54 = vld [vmem:[%s1780_s30 + $0xd8] sm:$0xff] }
  0xad   : > { %944 = vmatpush.msra.mxu3 %v468_v18  ;;  %550 = vmatpush.msra.mxu1 %v468_v18  ;;  %v423_v55 = vld [vmem:[%s1780_s30 + $0x50] sm:$0xff]  ;;  %v424_v56 = vld [vmem:[%s1780_s30 + $0x58] sm:$0xff]  ;;  %v441_v57 = vld [vmem:[%s1780_s30 + $0xe0] sm:$0xff] }
  0xae   : > { %929 = vmatpush.msra.mxu2 %v451_v19  ;;  %486 = vmatpush.msra.mxu0 %v451_v19  ;;  %v442_v58 = vld [vmem:[%s1780_s30 + $0xe8] sm:$0xff]  ;;  %v425_v59 = vld [vmem:[%s1780_s30 + $0x60] sm:$0xff]  ;;  %v443_v61 = vld [vmem:[%s1780_s30 + $0xf0] sm:$0xff] }
  0xaf   : > { %945 = vmatpush.msra.mxu3 %v467_v20  ;;  %551 = vmatpush.msra.mxu1 %v467_v20  ;;  %v426_v60 = vld [vmem:[%s1780_s30 + $0x68] sm:$0xff]  ;;  %v444_v62 = vld [vmem:[%s1780_s30 + $0xf8] sm:$0xff]  ;;  %v427_v63 = vld [vmem:[%s1780_s30 + $0x70] sm:$0xff] }
  0xb0   : > { %930 = vmatpush.msra.mxu2 %v450_v21  ;;  %487 = vmatpush.msra.mxu0 %v450_v21  ;;  %v428_v0 = vld [vmem:[%s1780_s30 + $0x78] sm:$0xff]  ;;  %v397_v2 = vld [vmem:[#allocation2 + $0x30] sm:$0xff]  ;;  %v405_v7 = vld [vmem:[#allocation2 + $0x40] sm:$0xff]  ;;  %s2071_s30 = sld [smem:[#allocation23_spill]] }
  0xb1   : > { %946 = vmatpush.msra.mxu3 %v466_v22  ;;  %552 = vmatpush.msra.mxu1 %v466_v22  ;;  %v398_v12 = vld [vmem:[#allocation2] sm:$0xff]  ;;  %v399_v22 = vld [vmem:[#allocation2 + $0x58] sm:$0xff] }
  0xb2   : > { %931 = vmatpush.msra.mxu2 %v449_v23  ;;  %488 = vmatpush.msra.mxu0 %v449_v23  ;;  %v406_v17 = vld [vmem:[#allocation2 + $0x20] sm:$0xff] }
  0xb3   : > { %947 = vmatpush.msra.mxu3 %v465_v24  ;;  %553 = vmatpush.msra.mxu1 %v465_v24 }
  0xb4   : > { %932 = vmatpush.msra.mxu2 %v448_v25  ;;  %489 = vmatpush.msra.mxu0 %v448_v25 }
  0xb5   : > { %948 = vmatpush.msra.mxu3 %v464_v26  ;;  %554 = vmatpush.msra.mxu1 %v464_v26 }
  0xb6   : > { %933 = vmatpush.msra.mxu2 %v447_v27  ;;  %490 = vmatpush.msra.mxu0 %v447_v27  ;;  %v407_v27 = vld [vmem:[#allocation2 + $0x10] sm:$0xff]  ;;  %p909_p1 = scmp.ne.s32.totalorder %s2071_s30, 1 }
  0xb7   : > { %949 = vmatpush.msra.mxu3 %v463_v28  ;;  %555 = vmatpush.msra.mxu1 %v463_v28 }
  0xb8   : > { %934 = vmatpush.msra.mxu2 %v446_v29  ;;  %491 = vmatpush.msra.mxu0 %v446_v29 }
  0xb9   : > { %950 = vmatpush.msra.mxu3 %v462_v30  ;;  %556 = vmatpush.msra.mxu1 %v462_v30 }
  0xba   : > { %935 = vmatpush.msra.mxu2 %v445_v31  ;;  %492 = vmatpush.msra.mxu0 %v445_v31 }
  0xbb   : > { %951 = vmatpush.msra.mxu3 %v461_v32  ;;  %517 = vmatmul.f32.vlgmr.msra.gmra.mxu2 %v429_v33 }
  0xbc   : > { %582 = vmatmul.f32.vlgmr.msra.gmra.mxu3 %v430_v34  ;;  %557 = vmatpush.msra.mxu1 %v461_v32  ;;  %v400_v32 = vld [vmem:[#allocation2 + $0x18] sm:$0xff] }
  0xbd   : > { %493 = vmatmul.f32.vlgmr.msra.gmra.mxu0 %v413_v35  ;;  %558 = vmatmul.f32.vlgmr.msra.gmra.mxu1 %v414_v36 }
  0xc3   : > { %520 = vmatmul.f32.gmra.mxu2 %v431_v37  ;;  %v408_v37 = vld [vmem:[#allocation2 + $0x38] sm:$0xff] }
  0xc4   : > { %585 = vmatmul.f32.gmra.mxu3 %v432_v38 }
  0xc5   : > { %496 = vmatmul.f32.gmra.mxu0 %v415_v39  ;;  %561 = vmatmul.f32.gmra.mxu1 %v416_v40 }
  0xcb   : > { %523 = vmatmul.f32.gmra.mxu2 %v433_v41 }
  0xcc   : > { %588 = vmatmul.f32.gmra.mxu3 %v434_v42  ;;  %v401_v42 = vld [vmem:[#allocation2 + $0x50] sm:$0xff] }
  0xcd   : > { %499 = vmatmul.f32.gmra.mxu0 %v417_v43  ;;  %564 = vmatmul.f32.gmra.mxu1 %v418_v44 }
  0xd3   : > { %526 = vmatmul.f32.gmra.mxu2 %v435_v45 }
  0xd4   : > { %591 = vmatmul.f32.gmra.mxu3 %v436_v46 }
  0xd5   : > { %502 = vmatmul.f32.gmra.mxu0 %v419_v47  ;;  %567 = vmatmul.f32.gmra.mxu1 %v420_v48  ;;  %v409_v47 = vld [vmem:[#allocation2 + $0x60] sm:$0xff] }
  0xdb   : > { %529 = vmatmul.f32.gmra.mxu2 %v437_v49 }
  0xdc   : > { %594 = vmatmul.f32.gmra.mxu3 %v438_v50 }
  0xdd   : > { %505 = vmatmul.f32.gmra.mxu0 %v421_v51  ;;  %570 = vmatmul.f32.gmra.mxu1 %v422_v52  ;;  %v402_v52 = vld [vmem:[#allocation2 + $0x68] sm:$0xff] }
  0xe3   : > { %532 = vmatmul.f32.gmra.mxu2 %v439_v53 }
  0xe4   : > { %597 = vmatmul.f32.gmra.mxu3 %v440_v54 }
  0xe5   : > { %508 = vmatmul.f32.gmra.mxu0 %v423_v55  ;;  %573 = vmatmul.f32.gmra.mxu1 %v424_v56 }
  0xeb   : > { %535 = vmatmul.f32.gmra.mxu2 %v441_v57  ;;  %v410_v57 = vld [vmem:[#allocation2 + $0x70] sm:$0xff] }
  0xec   : > { %600 = vmatmul.f32.gmra.mxu3 %v442_v58 }
  0xed   : > { %511 = vmatmul.f32.gmra.mxu0 %v425_v59  ;;  %576 = vmatmul.f32.gmra.mxu1 %v426_v60 }
  0xf3   : > { %538 = vmatmul.f32.gmra.mxu2 %v443_v61 }
  0xf4   : > { %603 = vmatmul.f32.gmra.mxu3 %v444_v62  ;;  %v403_v62 = vld [vmem:[#allocation2 + $0x8] sm:$0xff] }
  0xf5   : > { %514 = vmatmul.f32.gmra.mxu0 %v427_v63  ;;  %579 = vmatmul.f32.gmra.mxu1 %v428_v0 }
 0x13a   : > { %v494_v1 = vpop.f32.mrf.mxu0  ;;  %v559_v3 = vpop.f32.mrf.mxu1 }
 0x13b   : > { %v560_v4 = vadd.f32 %v559_v3, %v494_v1  ;;  %v411_v3 = vld [vmem:[#allocation2 + $0x78] sm:$0xff] }
 0x13d   : > { %v607_v5 = vadd.f32 %v560_v4, %v397_v2 }
 0x13e   : > { %v518_v6 = vpop.f32.mrf.mxu2 }
 0x13f   : > { %v583_v8 = vpop.f32.mrf.mxu3  ;;  %623 = vst [vmem:[#allocation2 + $0x30] sm:$0xff] %v607_v5 }
 0x140   : > { %v584_v9 = vadd.f32 %v583_v8, %v518_v6  ;;  %v404_v8 = vld [vmem:[#allocation2 + $0x48] sm:$0xff] }
 0x142   : > { %v615_v10 = vadd.f32 %v584_v9, %v405_v7  ;;  %v497_v11 = vpop.f32.mrf.mxu0  ;;  %v562_v13 = vpop.f32.mrf.mxu1 }
 0x143   : > { %v563_v14 = vadd.f32 %v562_v13, %v497_v11  ;;  %v412_v13 = vld [vmem:[#allocation2 + $0x28] sm:$0xff] }
 0x144   : > { %631 = vst [vmem:[#allocation2 + $0x40] sm:$0xff] %v615_v10 }
 0x145   : > { %v608_v15 = vadd.f32 %v563_v14, %v398_v12 }
 0x146   : > { %v521_v16 = vpop.f32.mrf.mxu2 }
 0x147   : > { %v586_v18 = vpop.f32.mrf.mxu3  ;;  %624 = vst [vmem:[#allocation2] sm:$0xff] %v608_v15 }
 0x148   : > { %v587_v19 = vadd.f32 %v586_v18, %v521_v16 }
 0x14a   : > { %v616_v20 = vadd.f32 %v587_v19, %v406_v17  ;;  %v500_v21 = vpop.f32.mrf.mxu0  ;;  %v565_v23 = vpop.f32.mrf.mxu1 }
 0x14b   : > { %v566_v24 = vadd.f32 %v565_v23, %v500_v21 }
 0x14c   : > { %632 = vst [vmem:[#allocation2 + $0x20] sm:$0xff] %v616_v20 }
 0x14d   : > { %v609_v25 = vadd.f32 %v566_v24, %v399_v22 }
 0x14e   : > { %v524_v26 = vpop.f32.mrf.mxu2 }
 0x14f   : > { %v589_v28 = vpop.f32.mrf.mxu3  ;;  %625 = vst [vmem:[#allocation2 + $0x58] sm:$0xff] %v609_v25 }
 0x150   : > { %v590_v29 = vadd.f32 %v589_v28, %v524_v26 }
 0x152   : > { %v617_v30 = vadd.f32 %v590_v29, %v407_v27  ;;  %v503_v31 = vpop.f32.mrf.mxu0  ;;  %v568_v33 = vpop.f32.mrf.mxu1 }
 0x153   : > { %v569_v34 = vadd.f32 %v568_v33, %v503_v31 }
 0x154   : > { %633 = vst [vmem:[#allocation2 + $0x10] sm:$0xff] %v617_v30 }
 0x155   : > { %v610_v35 = vadd.f32 %v569_v34, %v400_v32 }
 0x156   : > { %v527_v36 = vpop.f32.mrf.mxu2 }
 0x157   : > { %v592_v38 = vpop.f32.mrf.mxu3  ;;  %626 = vst [vmem:[#allocation2 + $0x18] sm:$0xff] %v610_v35 }
 0x158   : > { %v593_v39 = vadd.f32 %v592_v38, %v527_v36 }
 0x15a   : > { %v618_v40 = vadd.f32 %v593_v39, %v408_v37  ;;  %v506_v41 = vpop.f32.mrf.mxu0  ;;  %v571_v43 = vpop.f32.mrf.mxu1 }
 0x15b   : > { %v572_v44 = vadd.f32 %v571_v43, %v506_v41 }
 0x15c   : > { %634 = vst [vmem:[#allocation2 + $0x38] sm:$0xff] %v618_v40 }
 0x15d   : > { %v611_v45 = vadd.f32 %v572_v44, %v401_v42 }
 0x15e   : > { %v530_v46 = vpop.f32.mrf.mxu2 }
 0x15f   : > { %v595_v48 = vpop.f32.mrf.mxu3  ;;  %627 = vst [vmem:[#allocation2 + $0x50] sm:$0xff] %v611_v45 }
 0x160   : > { %v596_v49 = vadd.f32 %v595_v48, %v530_v46 }
 0x162   : > { %v619_v50 = vadd.f32 %v596_v49, %v409_v47  ;;  %v509_v51 = vpop.f32.mrf.mxu0  ;;  %v574_v53 = vpop.f32.mrf.mxu1 }
 0x163   : > { %v575_v54 = vadd.f32 %v574_v53, %v509_v51 }
 0x164   : > { %635 = vst [vmem:[#allocation2 + $0x60] sm:$0xff] %v619_v50 }
 0x165   : > { %v612_v55 = vadd.f32 %v575_v54, %v402_v52 }
 0x166   : > { %v533_v56 = vpop.f32.mrf.mxu2 }
 0x167   : > { %v598_v58 = vpop.f32.mrf.mxu3  ;;  %628 = vst [vmem:[#allocation2 + $0x68] sm:$0xff] %v612_v55 }
 0x168   : > { %v599_v59 = vadd.f32 %v598_v58, %v533_v56 }
 0x16a   : > { %v620_v60 = vadd.f32 %v599_v59, %v410_v57  ;;  %v512_v61 = vpop.f32.mrf.mxu0  ;;  %v577_v63 = vpop.f32.mrf.mxu1 }
 0x16b   : > { %v578_v0 = vadd.f32 %v577_v63, %v512_v61 }
 0x16c   : > { %636 = vst [vmem:[#allocation2 + $0x70] sm:$0xff] %v620_v60 }
 0x16d   : > { %v613_v1 = vadd.f32 %v578_v0, %v403_v62 }
 0x16e   : > { %v536_v2 = vpop.f32.mrf.mxu2 }
 0x16f   : > { %v601_v4 = vpop.f32.mrf.mxu3  ;;  %629 = vst [vmem:[#allocation2 + $0x8] sm:$0xff] %v613_v1 }
 0x170   : > { %v602_v5 = vadd.f32 %v601_v4, %v536_v2 }
 0x172   : > { %v621_v6 = vadd.f32 %v602_v5, %v411_v3  ;;  %v515_v7 = vpop.f32.mrf.mxu0  ;;  %v580_v9 = vpop.f32.mrf.mxu1 }
 0x173   : > { %v581_v10 = vadd.f32 %v580_v9, %v515_v7 }
 0x174   : > { %637 = vst [vmem:[#allocation2 + $0x78] sm:$0xff] %v621_v6 }
 0x175   : > { %v614_v11 = vadd.f32 %v581_v10, %v404_v8 }
 0x176   : > { %v539_v12 = vpop.f32.mrf.mxu2 }
 0x177   : > { %v604_v14 = vpop.f32.mrf.mxu3  ;;  %630 = vst [vmem:[#allocation2 + $0x48] sm:$0xff] %v614_v11 }
 0x178   : > { %v605_v15 = vadd.f32 %v604_v14, %v539_v12  ;;  %642 = sbr.rel (%p909_p1) target bundleno = 400 (0x190), region = 60 }
 0x17a   : > { %v622_v16 = vadd.f32 %v605_v15, %v412_v13 }
 0x17c   : > { %638 = vst [vmem:[#allocation2 + $0x28] sm:$0xff] %v622_v16 }
 0x17d   : > { %v643_v17 = vld [vmem:[#allocation2 + $0x30] sm:$0xff]  ;;  %v659_v18 = vld [vmem:[%s1797_s23] sm:$0xff]  ;;  %v660_v21 = vld [vmem:[%s1797_s23 + $0x8] sm:$0xff] }
 0x17e   : > { %v644_v19 = vld [vmem:[#allocation2] sm:$0xff]  ;;  %v675_v20 = vadd.f32 %v659_v18, %v643_v17  ;;  %v645_v22 = vld [vmem:[#allocation2 + $0x58] sm:$0xff]  ;;  %v661_v23 = vld [vmem:[%s1797_s23 + $0x10] sm:$0xff] }
 0x17f   : > { %v676_v24 = vadd.f32 %v660_v21, %v644_v19  ;;  %v677_v25 = vadd.f32 %v661_v23, %v645_v22  ;;  %v646_v26 = vld [vmem:[#allocation2 + $0x18] sm:$0xff]  ;;  %v647_v28 = vld [vmem:[#allocation2 + $0x50] sm:$0xff]  ;;  %v663_v30 = vld [vmem:[%s1797_s23 + $0x20] sm:$0xff] }
 0x180   : > { %v662_v27 = vld [vmem:[%s1797_s23 + $0x18] sm:$0xff]  ;;  %691 = vst [vmem:[%s1808_s15] sm:$0xff] %v675_v20  ;;  %v648_v31 = vld [vmem:[#allocation2 + $0x68] sm:$0xff]  ;;  %v679_v33 = vadd.f32 %v663_v30, %v647_v28  ;;  %v665_v36 = vld [vmem:[%s1797_s23 + $0x30] sm:$0xff] }
 0x181   : > { %v678_v29 = vadd.f32 %v662_v27, %v646_v26  ;;  %v664_v32 = vld [vmem:[%s1797_s23 + $0x28] sm:$0xff]  ;;  %692 = vst [vmem:[%s1808_s15 + $0x8] sm:$0xff] %v676_v24  ;;  %v666_v39 = vld [vmem:[%s1797_s23 + $0x38] sm:$0xff]  ;;  %v651_v40 = vld [vmem:[#allocation2 + $0x40] sm:$0xff] }
 0x182   : > { %v680_v34 = vadd.f32 %v664_v32, %v648_v31  ;;  %v649_v35 = vld [vmem:[#allocation2 + $0x8] sm:$0xff]  ;;  %693 = vst [vmem:[%s1808_s15 + $0x10] sm:$0xff] %v677_v25  ;;  %v667_v41 = vld [vmem:[%s1797_s23 + $0x40] sm:$0xff]  ;;  %v653_v45 = vld [vmem:[#allocation2 + $0x10] sm:$0xff] }
 0x183   : > { %v650_v37 = vld [vmem:[#allocation2 + $0x48] sm:$0xff]  ;;  %v681_v38 = vadd.f32 %v665_v36, %v649_v35  ;;  %694 = vst [vmem:[%s1808_s15 + $0x18] sm:$0xff] %v678_v29  ;;  %v652_v43 = vld [vmem:[#allocation2 + $0x20] sm:$0xff]  ;;  %v683_v46 = vadd.f32 %v667_v41, %v651_v40  ;;  %v669_v47 = vld [vmem:[%s1797_s23 + $0x50] sm:$0xff] }
 0x184   : > { %v682_v42 = vadd.f32 %v666_v39, %v650_v37  ;;  %v668_v44 = vld [vmem:[%s1797_s23 + $0x48] sm:$0xff]  ;;  %695 = vst [vmem:[%s1808_s15 + $0x20] sm:$0xff] %v679_v33  ;;  %v654_v48 = vld [vmem:[#allocation2 + $0x38] sm:$0xff]  ;;  %v655_v51 = vld [vmem:[#allocation2 + $0x60] sm:$0xff]  ;;  %v685_v53 = vadd.f32 %v669_v47, %v653_v45 }
 0x185   : > { %v670_v49 = vld [vmem:[%s1797_s23 + $0x58] sm:$0xff]  ;;  %696 = vst [vmem:[%s1808_s15 + $0x28] sm:$0xff] %v680_v34  ;;  %v684_v50 = vadd.f32 %v668_v44, %v652_v43  ;;  %v671_v52 = vld [vmem:[%s1797_s23 + $0x60] sm:$0xff]  ;;  %v656_v54 = vld [vmem:[#allocation2 + $0x70] sm:$0xff] }
 0x186   : > { %697 = vst [vmem:[%s1808_s15 + $0x30] sm:$0xff] %v681_v38  ;;  %v672_v55 = vld [vmem:[%s1797_s23 + $0x68] sm:$0xff]  ;;  %v686_v56 = vadd.f32 %v670_v49, %v654_v48  ;;  %v657_v57 = vld [vmem:[#allocation2 + $0x78] sm:$0xff]  ;;  %v673_v58 = vld [vmem:[%s1797_s23 + $0x70] sm:$0xff]  ;;  %v687_v59 = vadd.f32 %v671_v52, %v655_v51 }
 0x187   : > { %698 = vst [vmem:[%s1808_s15 + $0x38] sm:$0xff] %v682_v42  ;;  %v658_v60 = vld [vmem:[#allocation2 + $0x28] sm:$0xff]  ;;  %v674_v61 = vld [vmem:[%s1797_s23 + $0x78] sm:$0xff]  ;;  %v688_v62 = vadd.f32 %v672_v55, %v656_v54  ;;  %v689_v63 = vadd.f32 %v673_v58, %v657_v57 }
 0x188   : > { %699 = vst [vmem:[%s1808_s15 + $0x40] sm:$0xff] %v683_v46  ;;  %v690_v0 = vadd.f32 %v674_v61, %v658_v60 }
 0x189   : > { %700 = vst [vmem:[%s1808_s15 + $0x48] sm:$0xff] %v684_v50 }
 0x18a   : > { %701 = vst [vmem:[%s1808_s15 + $0x50] sm:$0xff] %v685_v53 }
 0x18b   : > { %702 = vst [vmem:[%s1808_s15 + $0x58] sm:$0xff] %v686_v56 }
 0x18c   : > { %703 = vst [vmem:[%s1808_s15 + $0x60] sm:$0xff] %v687_v59 }
 0x18d   : > { %704 = vst [vmem:[%s1808_s15 + $0x68] sm:$0xff] %v688_v62 }
 0x18e   : > { %705 = vst [vmem:[%s1808_s15 + $0x70] sm:$0xff] %v689_v63 }
 0x18f   : > { %706 = vst [vmem:[%s1808_s15 + $0x78] sm:$0xff] %v690_v0 }
 0x190 PF: > { %s2072_s24 = sld [smem:[#allocation25_spill]]  ;;  %s722_s22 = sshll.u32 %s1808_s15, 4  ;;  %s723_s22 = int_to_ptr.vmem [resolvable:$true] %s722_s22 }
 0x191   : > { %s2073_s10 = sld [smem:[#allocation24_spill]]  ;;  %s708_s16 = scalar_lea.sflag [#allocation5], %s317_s9 }
 0x192   : > { %s2074_s14 = sld [smem:[#allocation37_spill]] }
 0x196   : > { %s919_s17 = sshll.u32 %s2072_s24, 6 }
 0x197   : > { %s719_s12 = sadd.s32 %s2073_s10, %s919_s17 }
 0x198   : > { %s913_s2 = sshll.u32 %s719_s12, 3  ;;  %s1282_s15 = scalar_lea.hbm %s2074_s14, 1024 }
 0x199   : > { %s721_s6 = scalar_lea.hbm %s2074_s14, %s913_s2 }
 0x19a   : > { %s724_s23 = sshll.u32 %s721_s6, 4  ;;  %s725_s23 = int_to_ptr.hbm [resolvable:$true] %s724_s23 }
 0x19b   : > { %s1276_s13 = sshra.s32 %s725_s23, 4  ;;  %s1277_s13 = int_to_ptr.hbm [resolvable:$true] %s1276_s13 }
 0x19c   : > { %s1278_s27 = scalar_lea.hbm %s1277_s13, 128  ;;  %p1283_p11 = scmp.lt.s32.totalorder %s1277_s13, %s2074_s14 }
 0x19d   : > { %p1279_p12 = scmp.ne.s32.totalorder %s1277_s13, %s1278_s27  ;;  %p1284_p13 = scmp.lt.s32.totalorder %s1282_s15, %s1278_s27 }
 0x19f   : > { %p1280_p2 = pnand %p1279_p12, %p1767_p10  ;;  %p1285_p3 = por %p1284_p13, %p1283_p11 }
 0x1a1   : > { %p1281_p7 = pneg %p1280_p2 }
 0x1a3   : > { %p1286_p9 = pnand %p1285_p3, %p1281_p7 }
 0x1a5   : > { %1289 = shalt.err (!%p1286_p9)
}
 0x1a6   : > { %s1467_s9 = smov 128   ;;  %s1468_s10 = smov 512  }
 0x1a7   : > { %s1469_s17 = smov 8  }
 0x1a8   : > { %960 = dma.vmem_to_hbm [thread:$0]  (%p1767_p10), %s723_s22, 2048, %s725_s23, %s708_s16, %s1467_s9, %s1468_s10, %s1469_s17  }
 0x1a9 PF: > { %p980_p6 = scmp.ge.s32.totalorder %s1460_s7, 2  ;;  %s739_s12 = sand.u32 1, %s1400_s18  }
 0x1aa   : > { %p2075_p4 = scmp.ne.s32.totalorder %s2049_s1, 0  ;;  %s740_s2 = scalar_lea.sflag [#allocation5], %s739_s12 }
 0x1ac   : > { %p976_p0 = pnand %p980_p6, %p2075_p4 }
 0x1ae   : > { %p977_p8 = pneg %p976_p0 }
 0x1b0   : > { %1383 = dma.done.wait (%p977_p8), %s740_s2, 2048  }
 0x1b1   : > { %1385 = vsyncadd (%p977_p8), %s740_s2, 4294965248  ;;  %s26_s7 = sadd.s32 1, %s1460_s7   ;;  %s2077_s15 = sld [smem:[#allocation18_spill]] }
 0x1b2   : > { %p1931_p5 = scmp.ge.s32.totalorder %s26_s7, 18   ;;  %s2078_s16 = sld [smem:[#allocation19_spill]] }
 0x1b3   : > { %s2079_s11 = sld [smem:[#allocation21_spill]]  ;;  %s2087_s17 = smov %s1758_s8 }
 0x1b4   : > { %s2080_s22 = sld [smem:[#allocation22_spill]]  ;;  %s2088_s18 = smov %s1404_s19 }
 0x1b5   : > { %s2081_s1 = sld [smem:[#allocation31_spill]]  ;;  %s2089_s19 = smov %s1408_s20 }
 0x1b6   : > { %s2082_s27 = sld [smem:[#allocation26_spill]]  ;;  %s2090_s20 = smov %s1755_s21 }
 0x1b7   : > { %s2083_s29 = sld [smem:[#allocation27_spill]]  ;;  %s2092_s23 = smov %s2110_s3 }
 0x1b8   : > { %s2084_s30 = sld [smem:[#allocation28_spill]]  ;;  %s2093_s24 = smov %s1428_s25 }
 0x1b9   : > { %s2085_s6 = sld [smem:[#allocation32_spill]]  ;;  %s2091_s21 = smov %s2079_s11 }
 0x1ba   : > { %s2086_s13 = sld [smem:[#allocation30_spill]]  ;;  %s2094_s25 = smov %s1432_s26 }
 0x1bb   : > { %s2095_s26 = smov %s2081_s1  ;;  %s2096_s28 = smov %s1452_s5 }
 0x1bc   :  { %25 = sbr.rel (!%p1931_p5) target bundleno = 23 (0x17), region = 126 }
 0x1bf   : > { %s2097_s5 = smov %s2085_s6 }
 0x1c0   : > { %s2098_s6 = smov %s2086_s13 }
 0x1c1   :  { %746 = vsyncpa [#allocation4], 1 }
 0x1c2   :  { %748 = vsyncpa [#allocation4 + $0x1], 1 }
 0x1c3   :  { %749 = vsyncpa [#allocation7], 1 }
 0x1c4   :  { %751 = vsyncpa [#allocation7 + $0x1], 1 }
 0x1c5   :  { %752 = vsyncpa [#allocation10], 1 }
 0x1c6   :  { %754 = vsyncpa [#allocation10 + $0x1], 1 }
 0x1c7   :  { %755 = vsyncpa [#allocation5], 1 }
 0x1c8   :  { %757 = vsyncpa [#allocation5 + $0x1], 1 }

</bundles_post_ra>
